<compile_context>
chip_gen: v7x
topology: tpu7x:2x2x1
jax: 0.10.0
libtpu: 0.0.40
codegen_flags: <defaults>
</compile_context>

<pallas_src>
import functools
import math

import jax
import jax.numpy as jnp
from jax.experimental import pallas as pl
from jax.experimental.pallas import tpu as pltpu


def _round_up(x, m):
    return ((x + m - 1) // m) * m


def _cdiv(a, b):
    return -(-a // b)


def _choose_nb(batch, seq_len, target_n=128):
    """Samples packed per grid step (lane-batching).

    Targets a matmul N of ~target_n lanes; keeps >= 2 grid steps when possible
    so both v7x TensorCores get work under ("parallel",) grid semantics.
    """
    nb = max(1, min(batch, target_n // max(seq_len, 1)))
    if _cdiv(batch, nb) < 2 and batch > 1:
        nb = _cdiv(batch, 2)
    return nb


# ----------------------------- Fused Pallas kernel -----------------------------

def _make_tcn_kernel(*, block_cfg, r_fc, c_last, classes, k_size, L, W,
                     c_row, kcr, mxu_dtype):
    """block_cfg: tuple of (c_in, c_out, dilation, r_w1, r_w2, r_wd_or_None)
    with static row offsets into the packed parameter slab."""

    def kernel(x_ref, slab_ref, rpos_ref, gt_ref, o_ref, im_ref):
        # rpos[col] = col % L : position of the column inside its sample's
        # L-lane segment (time runs REVERSED along lanes, see wrapper).
        rpos = rpos_ref[...]                              # (1, W) int32

        # Zero the im2col scratch once per grid step: channel rows >= a conv's
        # c_in in each tap group are multiplied by zero weight columns and must
        # be finite (stale VMEM from a previous kernel could be NaN/Inf), and
        # the trailing `off` columns of the shift-0 group are read by the tap
        # loads before being masked away.  NOT guarded with program_id == 0:
        # under ("parallel",) megacore sharding core 1 never runs step 0.
        im_ref[...] = jnp.zeros_like(im_ref)

        def load_params(row0, c_out, width):
            wb = slab_ref[row0:row0 + c_out, :]           # (c_out, kcr + 1)
            return wb[:, :width].astype(mxu_dtype), wb[:, kcr:kcr + 1]

        def conv(a, dilation, row0, c_out):
            """Causal dilated conv as ONE im2col MXU matmul.

            `a` is the (c_in, W) input in reversed-time lane layout.  Because
            time is reversed, the tap with temporal shift sh = (k-1-j)*dilation
            is `a` read at lane offset +sh, so the im2col is built with one
            aligned store of `a` plus (k-1) lane-offset loads + masks -- no
            unaligned stores and no cross-lane rolls.
            """
            c_in = a.shape[0]
            last = (k_size - 1) * c_row
            # shift-0 tap group (also serves as the read source for the other
            # taps); its trailing `off` columns stay zero from the init above.
            im_ref[last:last + c_in, 0:W] = a
            for j in range(k_size - 1):
                sh = (k_size - 1 - j) * dilation
                row = j * c_row
                if sh >= L:                       # tap is entirely causal pad
                    im_ref[row:row + c_in, 0:W] = jnp.zeros_like(a)
                    continue
                tap = im_ref[last:last + c_in, sh:sh + W]
                # zero the positions that would read causal padding (or the
                # neighbouring sample) -- no cross-sample leakage.
                tap = jnp.where(rpos < (L - sh), tap, 0.0)
                im_ref[row:row + c_in, 0:W] = tap
            w, b = load_params(row0, c_out, kcr)
            acc = jnp.dot(w, im_ref[:, 0:W].astype(mxu_dtype),
                          preferred_element_type=jnp.float32)
            return acc + b

        # ---------------- TemporalConvNet ----------------
        a = x_ref[0].astype(jnp.float32)                  # (c_in0, W)
        for (c_in, c_out, dilation, r_w1, r_w2, r_wd) in block_cfg:
            blk_in = a
            # conv1 + chomp + ReLU   (dropout = identity at inference)
            h = jnp.maximum(conv(a, dilation, r_w1, c_out), 0.0)
            # conv2 + chomp + ReLU
            h = jnp.maximum(conv(h, dilation, r_w2, c_out), 0.0)
            if r_wd is None:                               # identity residual
                res = blk_in
            else:                                          # 1x1 conv residual
                wd, bd = load_params(r_wd, c_out, c_in)
                res = jnp.dot(wd, blk_in.astype(mxu_dtype),
                              preferred_element_type=jnp.float32) + bd
            a = jnp.maximum(h + res, 0.0)

        # -------- head: ReLU -> per-sample sum over time -> Linear --------
        h = jnp.maximum(a, 0.0)                            # idempotent ReLU
        # per-sample time sum as a tiny MXU matmul with the block-diagonal
        # ones matrix (avoids lane-splitting reshapes / in-kernel transposes).
        hs = jnp.dot(h, gt_ref[...],
                     preferred_element_type=jnp.float32)   # (c_last, NB)
        fc_w, fc_b = load_params(r_fc, classes, c_last)
        logits = jnp.dot(fc_w, hs.astype(mxu_dtype),
                         preferred_element_type=jnp.float32) + fc_b  # (cls, NB)
        o_ref[0] = logits.astype(o_ref.dtype)

    return kernel


# ----------------------------- Parameter packing -----------------------------

def _flatten_conv_weight(w, c_row):
    """(C_out, C_in, k) torch-Conv1d layout -> (C_out, k*c_row); the channel
    axis of each tap group is zero-padded to c_row so every conv shares one
    im2col row stride."""
    c_out, c_in, k = w.shape
    w_pad = jnp.pad(w, ((0, 0), (0, c_row - c_in), (0, 0)))   # (c_out, c_row, k)
    return jnp.transpose(w_pad, (0, 2, 1)).reshape(c_out, k * c_row)


def _pack_params(params, *, k_size, c_row):
    """Pack every weight/bias into ONE (rows, k*c_row + 1) f32 slab.

    Weights live in columns [0, k*c_row); the bias of each layer lives in the
    final column of the same rows.  Row offsets are 8-aligned (sublanes).
    Returns (slab, block_cfg, r_fc) with static row offsets for the kernel.
    """
    kcr = k_size * c_row
    width = kcr + 1
    pieces = []
    cursor = 0

    def add(mat, bias):
        nonlocal cursor
        c_out = mat.shape[0]
        row0 = cursor
        piece = jnp.zeros((c_out, width), jnp.float32)
        piece = piece.at[:, :mat.shape[1]].set(mat.astype(jnp.float32))
        piece = piece.at[:, kcr].set(bias.astype(jnp.float32))
        pieces.append((row0, piece))
        cursor = _round_up(row0 + c_out, 8)
        return row0

    block_cfg = []
    for i, blk in enumerate(params["blocks"]):
        c_out, c_in, _ = blk["w1"].shape
        r1 = add(_flatten_conv_weight(blk["w1"], c_row), blk["b1"])
        r2 = add(_flatten_conv_weight(blk["w2"], c_row), blk["b2"])
        rd = None
        if blk["wd"] is not None:
            rd = add(blk["wd"][:, :, 0], blk["bd"])        # 1x1 conv weight
        block_cfg.append((c_in, c_out, 2 ** i, r1, r2, rd))

    r_fc = add(params["fc_w"], params["fc_b"])

    slab = jnp.zeros((_round_up(cursor, 8), width), jnp.float32)
    for row0, piece in pieces:
        slab = slab.at[row0:row0 + piece.shape[0], :].set(piece)
    return slab, tuple(block_cfg), r_fc


# ----------------------------- Wrapper -----------------------------

def tcn_forward(params, x, xxx, *, k_size, mxu_dtype=jnp.float32):
    """Fused forward pass of TCNModel: all TemporalBlocks + head, one pallas_call.

    x:   (B, input_sz, L) -- NCL layout, like torch Conv1d.
    xxx: unused second argument of TCNModel.forward.
    mxu_dtype: dtype of the matmul operands (accumulation is always f32).  Use
      jnp.bfloat16 on v6e/v7x for ~3x MXU throughput (f32 costs ~3 MXU passes);
      numerics then differ from the f32 reference at the ~1e-2 level.
    """
    del xxx  # unused by the reference forward
    B, c_in0, L = x.shape
    blocks = params["blocks"]
    classes, c_last = params["fc_w"].shape
    n_blocks = len(blocks)

    chan = [c_in0] + [blk["w1"].shape[0] for blk in blocks]
    c_row = _round_up(max(chan), 8)            # im2col tap-group stride (sublanes)
    kcr = k_size * c_row
    off = (k_size - 1) * (2 ** (n_blocks - 1))  # max causal shift (trailing pad)

    # ---- lane-batching: NB samples per grid step, packed along lanes ----
    NB = _choose_nb(B, L)
    W = NB * L
    T = _cdiv(B, NB)
    Bp = T * NB

    # Time is stored REVERSED along lanes so every causal dilated tap of the
    # im2col becomes a lane-offset *load* (plus a cheap mask); all VMEM stores
    # inside the kernel stay full-width and lane-aligned.
    xr = x[:, :, ::-1].astype(jnp.float32)
    if Bp != B:
        xr = jnp.concatenate(
            [xr, jnp.zeros((Bp - B, c_in0, L), jnp.float32)], axis=0)
    xp = xr.reshape(T, NB, c_in0, L).transpose(0, 2, 1, 3).reshape(T, c_in0, W)

    # ---- pack every parameter into one VMEM slab (single DMA) ----
    slab, block_cfg, r_fc = _pack_params(params, k_size=k_size, c_row=c_row)

    # column -> position inside its sample's L-lane segment
    rpos = (jnp.arange(W, dtype=jnp.int32) % L).reshape(1, W)
    # block-diagonal ones: gt[col, s] = 1 iff column belongs to sample s
    gt = (jnp.arange(W)[:, None] // L
          == jnp.arange(NB)[None, :]).astype(jnp.float32)

    kernel = _make_tcn_kernel(
        block_cfg=block_cfg, r_fc=r_fc, c_last=c_last, classes=classes,
        k_size=k_size, L=L, W=W, c_row=c_row, kcr=kcr, mxu_dtype=mxu_dtype)

    out = pl.pallas_call(
        kernel,
        out_shape=jax.ShapeDtypeStruct((T, classes, NB), jnp.float32),
        grid=(T,),
        in_specs=[
            pl.BlockSpec((1, c_in0, W), lambda t: (t, 0, 0)),   # NB samples
            pl.BlockSpec(slab.shape, lambda t: (0, 0)),         # packed params
            pl.BlockSpec(rpos.shape, lambda t: (0, 0)),         # col % L
            pl.BlockSpec(gt.shape, lambda t: (0, 0)),           # time-sum ones
        ],
        out_specs=pl.BlockSpec((1, classes, NB), lambda t: (t, 0, 0)),
        scratch_shapes=[pltpu.VMEM((kcr, W + off), jnp.float32)],   # im2col
        compiler_params=pltpu.CompilerParams(
            dimension_semantics=("parallel",)),
    )(xp, slab, rpos, gt)

    # (T, classes, NB) -> (B, classes): wrapper-side layout plumbing only.
    return out.transpose(0, 2, 1).reshape(Bp, classes)[:B]


# ----------------------------- Pure-JAX reference -----------------------------

def _ref_causal_conv(a, w, b, dilation):
    """Causal dilated Conv1d + chomp (torch semantics).  a: (B, C_in, L)."""
    k = w.shape[-1]
    L = a.shape[-1]
    a_p = jnp.pad(a, ((0, 0), (0, 0), ((k - 1) * dilation, 0)))
    out = 0.0
    for j in range(k):
        out = out + jnp.einsum("oi,bit->bot", w[:, :, j],
                               a_p[:, :, j * dilation:j * dilation + L])
    return out + b[None, :, None]


def tcn_reference(params, x, *, k_size):
    """Pure-JAX reference of TCNModel.forward (inference mode)."""
    del k_size  # implicit in the weight shapes
    a = x
    for i, blk in enumerate(params["blocks"]):
        d = 2 ** i
        h = jax.nn.relu(_ref_causal_conv(a, blk["w1"], blk["b1"], d))
        h = jax.nn.relu(_ref_causal_conv(h, blk["w2"], blk["b2"], d))
        if blk["wd"] is None:
            res = a
        else:
            res = (jnp.einsum("oi,bit->bot", blk["wd"][:, :, 0], a)
                   + blk["bd"][None, :, None])
        a = jax.nn.relu(h + res)
    s = jax.nn.relu(a).sum(axis=-1)                     # (B, c_last)
    return s @ params["fc_w"].T + params["fc_b"][None, :]


# ----------------------------- Parameter init -----------------------------

def init_params(key, input_sz, num_channels, k_size, classes):
    """Deterministic init mimicking PyTorch Conv1d/Linear default ranges.
    Weights are stored in torch Conv1d layout (C_out, C_in, k)."""
    params = {"blocks": []}
    in_ch = input_sz
    for out_ch in num_channels:
        key, k1, k2, k3, k4, k5, k6 = jax.random.split(key, 7)
        b1 = 1.0 / math.sqrt(in_ch * k_size)
        b2 = 1.0 / math.sqrt(out_ch * k_size)
        blk = {
            "w1": jax.random.uniform(k1, (out_ch, in_ch, k_size), jnp.float32,
                                     -b1, b1),
            "b1": jax.random.uniform(k2, (out_ch,), jnp.float32, -b1, b1),
            "w2": jax.random.uniform(k3, (out_ch, out_ch, k_size), jnp.float32,
                                     -b2, b2),
            "b2": jax.random.uniform(k4, (out_ch,), jnp.float32, -b2, b2),
        }
        if in_ch != out_ch:
            bd = 1.0 / math.sqrt(in_ch)
            blk["wd"] = jax.random.uniform(k5, (out_ch, in_ch, 1), jnp.float32,
                                           -bd, bd)
            blk["bd"] = jax.random.uniform(k6, (out_ch,), jnp.float32, -bd, bd)
        else:
            blk["wd"] = None
            blk["bd"] = None
        params["blocks"].append(blk)
        in_ch = out_ch

    key, kf1, kf2 = jax.random.split(key, 3)
    bf = 1.0 / math.sqrt(num_channels[-1])
    params["fc_w"] = jax.random.uniform(kf1, (classes, num_channels[-1]),
                                        jnp.float32, -bf, bf)
    params["fc_b"] = jax.random.uniform(kf2, (classes,), jnp.float32, -bf, bf)
    return params


# ----------------------------- main -----------------------------

if __name__ == "__main__":
    # TCNModel(input_sz=4, num_channels=[8, 8, 16], k_size=3, classes=5)
    input_sz = 4
    num_channels = [8, 8, 16]      # dilations 1, 2, 4
    k_size = 3
    classes = 5
    B, L = 16, 16                  # 16 samples -> 2 lane-batched grid steps of 8

    key = jax.random.PRNGKey(0)
    key, kx = jax.random.split(key)
    x = jax.random.normal(kx, (B, input_sz, L), jnp.float32)   # NCL, like torch
    xxx = jnp.zeros((B,), jnp.float32)                         # unused 2nd arg

    params = init_params(key, input_sz, num_channels, k_size, classes)

    # f32 MXU path (matches the PyTorch reference numerics).
    fwd = jax.jit(functools.partial(tcn_forward, k_size=k_size))
    out = jax.block_until_ready(fwd(params, x, xxx))
    assert out.shape == (B, classes), out.shape
    assert bool(jnp.all(jnp.isfinite(out)))

    ref = tcn_reference(params, x, k_size=k_size)
    err = float(jnp.max(jnp.abs(out - ref)))
    # loose enough to absorb MXU f32-pass emulation, tight enough to catch
    # any wiring/tap/mask bug (those show up at O(0.1 - 1)).
    assert err < 5e-2, f"f32 kernel mismatch vs reference: max abs err {err}"

    # bf16-MXU variant (recommended on v6e/v7x; looser numerics by design).
    fwd_bf16 = jax.jit(functools.partial(tcn_forward, k_size=k_size,
                                         mxu_dtype=jnp.bfloat16))
    out_bf16 = jax.block_until_ready(fwd_bf16(params, x, xxx))
    assert bool(jnp.all(jnp.isfinite(out_bf16)))
    err_bf16 = float(jnp.max(jnp.abs(out_bf16 - ref)))
    assert err_bf16 < 0.3, f"bf16 kernel mismatch vs reference: {err_bf16}"

    print("KERNEL_OK")
</pallas_src>

<mosaic_0001>
module attributes {stable_mosaic.version = 11 : i64} {
  func.func @kernel(%arg0: i32, %arg1: memref<1x4x128xf32, #tpu.memory_space<vmem>>, %arg2: memref<96x49xf32, #tpu.memory_space<vmem>>, %arg3: memref<1x128xi32, #tpu.memory_space<vmem>>, %arg4: memref<128x8xf32, #tpu.memory_space<vmem>>, %arg5: memref<1x5x8xf32, #tpu.memory_space<vmem>>, %arg6: memref<48x136xf32, #tpu.memory_space<vmem>>) attributes {dimension_semantics = [#tpu.dimension_semantics<parallel>], iteration_bounds = array<i64: 2>, scalar_prefetch = 0 : i64, scratch_operands = 1 : i64, tpu.core_type = #tpu.core_type<tc>, window_params = [{transform_indices = @transform_0, window_bounds = array<i64: 1, 4, 128>}, {pipeline_mode = #tpu.pipeline_mode<synchronous>, transform_indices = @transform_1, window_bounds = array<i64: 96, 49>}, {pipeline_mode = #tpu.pipeline_mode<synchronous>, transform_indices = @transform_2, window_bounds = array<i64: 1, 128>}, {pipeline_mode = #tpu.pipeline_mode<synchronous>, transform_indices = @transform_3, window_bounds = array<i64: 128, 8>}, {transform_indices = @transform_4, window_bounds = array<i64: 1, 5, 8>}]} {
    %c0 = arith.constant 0 : index
    %c0_0 = arith.constant 0 : index
    %0 = vector.load %arg3[%c0, %c0_0] : memref<1x128xi32, #tpu.memory_space<vmem>>, vector<1x128xi32>
    %cst = arith.constant 0.000000e+00 : f32
    %1 = vector.broadcast %cst : f32 to vector<48x136xf32>
    %c0_1 = arith.constant 0 : index
    %c0_2 = arith.constant 0 : index
    %2 = vector.load %arg6[%c0_1, %c0_2] : memref<48x136xf32, #tpu.memory_space<vmem>>, vector<48x136xf32>
    tpu.vector_store %arg6[%c0_1, %c0_2], %1 {strides = array<i32>} : memref<48x136xf32, #tpu.memory_space<vmem>>, vector<48x136xf32>,
    %c0_3 = arith.constant 0 : index
    %c0_4 = arith.constant 0 : index
    %c0_5 = arith.constant 0 : index
    %3 = vector.load %arg1[%c0_3, %c0_4, %c0_5] : memref<1x4x128xf32, #tpu.memory_space<vmem>>, vector<1x4x128xf32>
    %4 = vector.shape_cast %3 : vector<1x4x128xf32> to vector<4x128xf32>
    %c32 = arith.constant 32 : index
    %c0_6 = arith.constant 0 : index
    %5 = vector.load %arg6[%c32, %c0_6] : memref<48x136xf32, #tpu.memory_space<vmem>>, vector<4x128xf32>
    tpu.vector_store %arg6[%c32, %c0_6], %4 {strides = array<i32>} : memref<48x136xf32, #tpu.memory_space<vmem>>, vector<4x128xf32>,
    %c32_7 = arith.constant 32 : index
    %c2 = arith.constant 2 : index
    %6 = vector.load %arg6[%c32_7, %c2] : memref<48x136xf32, #tpu.memory_space<vmem>>, vector<4x128xf32>
    %c14_i32 = arith.constant 14 : i32
    %7 = vector.broadcast %c14_i32 : i32 to vector<1x128xi32>
    %8 = arith.cmpi slt, %0, %7 : vector<1x128xi32>
    %cst_8 = arith.constant 0.000000e+00 : f32
    %9 = vector.shape_cast %8 : vector<1x128xi1> to vector<1x128xi1>
    %10 = vector.broadcast %9 : vector<1x128xi1> to vector<4x128xi1>
    %11 = vector.broadcast %cst_8 : f32 to vector<4x128xf32>
    %12 = arith.select %10, %6, %11 : vector<4x128xi1>, vector<4x128xf32>
    %c0_9 = arith.constant 0 : index
    %c0_10 = arith.constant 0 : index
    %13 = vector.load %arg6[%c0_9, %c0_10] : memref<48x136xf32, #tpu.memory_space<vmem>>, vector<4x128xf32>
    tpu.vector_store %arg6[%c0_9, %c0_10], %12 {strides = array<i32>} : memref<48x136xf32, #tpu.memory_space<vmem>>, vector<4x128xf32>,
    %c32_11 = arith.constant 32 : index
    %c1 = arith.constant 1 : index
    %14 = vector.load %arg6[%c32_11, %c1] : memref<48x136xf32, #tpu.memory_space<vmem>>, vector<4x128xf32>
    %c15_i32 = arith.constant 15 : i32
    %15 = vector.broadcast %c15_i32 : i32 to vector<1x128xi32>
    %16 = arith.cmpi slt, %0, %15 : vector<1x128xi32>
    %cst_12 = arith.constant 0.000000e+00 : f32
    %17 = vector.shape_cast %16 : vector<1x128xi1> to vector<1x128xi1>
    %18 = vector.broadcast %17 : vector<1x128xi1> to vector<4x128xi1>
    %19 = vector.broadcast %cst_12 : f32 to vector<4x128xf32>
    %20 = arith.select %18, %14, %19 : vector<4x128xi1>, vector<4x128xf32>
    %c16 = arith.constant 16 : index
    %c0_13 = arith.constant 0 : index
    %21 = vector.load %arg6[%c16, %c0_13] : memref<48x136xf32, #tpu.memory_space<vmem>>, vector<4x128xf32>
    tpu.vector_store %arg6[%c16, %c0_13], %20 {strides = array<i32>} : memref<48x136xf32, #tpu.memory_space<vmem>>, vector<4x128xf32>,
    %c0_14 = arith.constant 0 : index
    %c0_15 = arith.constant 0 : index
    %22 = vector.load %arg2[%c0_14, %c0_15] : memref<96x49xf32, #tpu.memory_space<vmem>>, vector<8x49xf32>
    %23 = vector.extract_strided_slice %22 {offsets = [0, 0], sizes = [8, 48], strides = [1, 1]} : vector<8x49xf32> to vector<8x48xf32>
    %24 = vector.extract_strided_slice %22 {offsets = [0, 48], sizes = [8, 1], strides = [1, 1]} : vector<8x49xf32> to vector<8x1xf32>
    %c0_16 = arith.constant 0 : index
    %c0_17 = arith.constant 0 : index
    %25 = vector.load %arg6[%c0_16, %c0_17] : memref<48x136xf32, #tpu.memory_space<vmem>>, vector<48x128xf32>
    %cst_18 = arith.constant dense<0.000000e+00> : vector<8x128xf32>
    %26 = tpu.matmul %23, %25, %cst_18 {dimension_numbers = #tpu.dot_dimension_numbers<[1], [0], [0], [1], [0, 0, 1, 1], [], []>} : vector<8x48xf32>, vector<48x128xf32>, vector<8x128xf32> -> vector<8x128xf32>
    %27 = vector.broadcast %24 : vector<8x1xf32> to vector<8x128xf32>
    %28 = arith.addf %26, %27 : vector<8x128xf32>
    %cst_19 = arith.constant 0.000000e+00 : f32
    %29 = vector.broadcast %cst_19 : f32 to vector<8x128xf32>
    %30 = arith.maximumf %28, %29 : vector<8x128xf32>
    %c32_20 = arith.constant 32 : index
    %c0_21 = arith.constant 0 : index
    %31 = vector.load %arg6[%c32_20, %c0_21] : memref<48x136xf32, #tpu.memory_space<vmem>>, vector<8x128xf32>
    tpu.vector_store %arg6[%c32_20, %c0_21], %30 {strides = array<i32>} : memref<48x136xf32, #tpu.memory_space<vmem>>, vector<8x128xf32>,
    %c32_22 = arith.constant 32 : index
    %c2_23 = arith.constant 2 : index
    %32 = vector.load %arg6[%c32_22, %c2_23] : memref<48x136xf32, #tpu.memory_space<vmem>>, vector<8x128xf32>
    %c14_i32_24 = arith.constant 14 : i32
    %33 = vector.broadcast %c14_i32_24 : i32 to vector<1x128xi32>
    %34 = arith.cmpi slt, %0, %33 : vector<1x128xi32>
    %cst_25 = arith.constant 0.000000e+00 : f32
    %35 = vector.shape_cast %34 : vector<1x128xi1> to vector<1x128xi1>
    %36 = vector.broadcast %35 : vector<1x128xi1> to vector<8x128xi1>
    %37 = vector.broadcast %cst_25 : f32 to vector<8x128xf32>
    %38 = arith.select %36, %32, %37 : vector<8x128xi1>, vector<8x128xf32>
    %c0_26 = arith.constant 0 : index
    %c0_27 = arith.constant 0 : index
    %39 = vector.load %arg6[%c0_26, %c0_27] : memref<48x136xf32, #tpu.memory_space<vmem>>, vector<8x128xf32>
    tpu.vector_store %arg6[%c0_26, %c0_27], %38 {strides = array<i32>} : memref<48x136xf32, #tpu.memory_space<vmem>>, vector<8x128xf32>,
    %c32_28 = arith.constant 32 : index
    %c1_29 = arith.constant 1 : index
    %40 = vector.load %arg6[%c32_28, %c1_29] : memref<48x136xf32, #tpu.memory_space<vmem>>, vector<8x128xf32>
    %c15_i32_30 = arith.constant 15 : i32
    %41 = vector.broadcast %c15_i32_30 : i32 to vector<1x128xi32>
    %42 = arith.cmpi slt, %0, %41 : vector<1x128xi32>
    %cst_31 = arith.constant 0.000000e+00 : f32
    %43 = vector.shape_cast %42 : vector<1x128xi1> to vector<1x128xi1>
    %44 = vector.broadcast %43 : vector<1x128xi1> to vector<8x128xi1>
    %45 = vector.broadcast %cst_31 : f32 to vector<8x128xf32>
    %46 = arith.select %44, %40, %45 : vector<8x128xi1>, vector<8x128xf32>
    %c16_32 = arith.constant 16 : index
    %c0_33 = arith.constant 0 : index
    %47 = vector.load %arg6[%c16_32, %c0_33] : memref<48x136xf32, #tpu.memory_space<vmem>>, vector<8x128xf32>
    tpu.vector_store %arg6[%c16_32, %c0_33], %46 {strides = array<i32>} : memref<48x136xf32, #tpu.memory_space<vmem>>, vector<8x128xf32>,
    %c8 = arith.constant 8 : index
    %c0_34 = arith.constant 0 : index
    %48 = vector.load %arg2[%c8, %c0_34] : memref<96x49xf32, #tpu.memory_space<vmem>>, vector<8x49xf32>
    %49 = vector.extract_strided_slice %48 {offsets = [0, 0], sizes = [8, 48], strides = [1, 1]} : vector<8x49xf32> to vector<8x48xf32>
    %50 = vector.extract_strided_slice %48 {offsets = [0, 48], sizes = [8, 1], strides = [1, 1]} : vector<8x49xf32> to vector<8x1xf32>
    %c0_35 = arith.constant 0 : index
    %c0_36 = arith.constant 0 : index
    %51 = vector.load %arg6[%c0_35, %c0_36] : memref<48x136xf32, #tpu.memory_space<vmem>>, vector<48x128xf32>
    %cst_37 = arith.constant dense<0.000000e+00> : vector<8x128xf32>
    %52 = tpu.matmul %49, %51, %cst_37 {dimension_numbers = #tpu.dot_dimension_numbers<[1], [0], [0], [1], [0, 0, 1, 1], [], []>} : vector<8x48xf32>, vector<48x128xf32>, vector<8x128xf32> -> vector<8x128xf32>
    %53 = vector.broadcast %50 : vector<8x1xf32> to vector<8x128xf32>
    %54 = arith.addf %52, %53 : vector<8x128xf32>
    %cst_38 = arith.constant 0.000000e+00 : f32
    %55 = vector.broadcast %cst_38 : f32 to vector<8x128xf32>
    %56 = arith.maximumf %54, %55 : vector<8x128xf32>
    %c16_39 = arith.constant 16 : index
    %c0_40 = arith.constant 0 : index
    %57 = vector.load %arg2[%c16_39, %c0_40] : memref<96x49xf32, #tpu.memory_space<vmem>>, vector<8x49xf32>
    %58 = vector.extract_strided_slice %57 {offsets = [0, 0], sizes = [8, 4], strides = [1, 1]} : vector<8x49xf32> to vector<8x4xf32>
    %59 = vector.extract_strided_slice %57 {offsets = [0, 48], sizes = [8, 1], strides = [1, 1]} : vector<8x49xf32> to vector<8x1xf32>
    %cst_41 = arith.constant dense<0.000000e+00> : vector<8x128xf32>
    %60 = tpu.matmul %58, %4, %cst_41 {dimension_numbers = #tpu.dot_dimension_numbers<[1], [0], [0], [1], [0, 0, 1, 1], [], []>} : vector<8x4xf32>, vector<4x128xf32>, vector<8x128xf32> -> vector<8x128xf32>
    %61 = vector.broadcast %59 : vector<8x1xf32> to vector<8x128xf32>
    %62 = arith.addf %60, %61 : vector<8x128xf32>
    %63 = arith.addf %56, %62 : vector<8x128xf32>
    %cst_42 = arith.constant 0.000000e+00 : f32
    %64 = vector.broadcast %cst_42 : f32 to vector<8x128xf32>
    %65 = arith.maximumf %63, %64 : vector<8x128xf32>
    %c32_43 = arith.constant 32 : index
    %c0_44 = arith.constant 0 : index
    %66 = vector.load %arg6[%c32_43, %c0_44] : memref<48x136xf32, #tpu.memory_space<vmem>>, vector<8x128xf32>
    tpu.vector_store %arg6[%c32_43, %c0_44], %65 {strides = array<i32>} : memref<48x136xf32, #tpu.memory_space<vmem>>, vector<8x128xf32>,
    %c32_45 = arith.constant 32 : index
    %c4 = arith.constant 4 : index
    %67 = vector.load %arg6[%c32_45, %c4] : memref<48x136xf32, #tpu.memory_space<vmem>>, vector<8x128xf32>
    %c12_i32 = arith.constant 12 : i32
    %68 = vector.broadcast %c12_i32 : i32 to vector<1x128xi32>
    %69 = arith.cmpi slt, %0, %68 : vector<1x128xi32>
    %cst_46 = arith.constant 0.000000e+00 : f32
    %70 = vector.shape_cast %69 : vector<1x128xi1> to vector<1x128xi1>
    %71 = vector.broadcast %70 : vector<1x128xi1> to vector<8x128xi1>
    %72 = vector.broadcast %cst_46 : f32 to vector<8x128xf32>
    %73 = arith.select %71, %67, %72 : vector<8x128xi1>, vector<8x128xf32>
    %c0_47 = arith.constant 0 : index
    %c0_48 = arith.constant 0 : index
    %74 = vector.load %arg6[%c0_47, %c0_48] : memref<48x136xf32, #tpu.memory_space<vmem>>, vector<8x128xf32>
    tpu.vector_store %arg6[%c0_47, %c0_48], %73 {strides = array<i32>} : memref<48x136xf32, #tpu.memory_space<vmem>>, vector<8x128xf32>,
    %c32_49 = arith.constant 32 : index
    %c2_50 = arith.constant 2 : index
    %75 = vector.load %arg6[%c32_49, %c2_50] : memref<48x136xf32, #tpu.memory_space<vmem>>, vector<8x128xf32>
    %c14_i32_51 = arith.constant 14 : i32
    %76 = vector.broadcast %c14_i32_51 : i32 to vector<1x128xi32>
    %77 = arith.cmpi slt, %0, %76 : vector<1x128xi32>
    %cst_52 = arith.constant 0.000000e+00 : f32
    %78 = vector.shape_cast %77 : vector<1x128xi1> to vector<1x128xi1>
    %79 = vector.broadcast %78 : vector<1x128xi1> to vector<8x128xi1>
    %80 = vector.broadcast %cst_52 : f32 to vector<8x128xf32>
    %81 = arith.select %79, %75, %80 : vector<8x128xi1>, vector<8x128xf32>
    %c16_53 = arith.constant 16 : index
    %c0_54 = arith.constant 0 : index
    %82 = vector.load %arg6[%c16_53, %c0_54] : memref<48x136xf32, #tpu.memory_space<vmem>>, vector<8x128xf32>
    tpu.vector_store %arg6[%c16_53, %c0_54], %81 {strides = array<i32>} : memref<48x136xf32, #tpu.memory_space<vmem>>, vector<8x128xf32>,
    %c24 = arith.constant 24 : index
    %c0_55 = arith.constant 0 : index
    %83 = vector.load %arg2[%c24, %c0_55] : memref<96x49xf32, #tpu.memory_space<vmem>>, vector<8x49xf32>
    %84 = vector.extract_strided_slice %83 {offsets = [0, 0], sizes = [8, 48], strides = [1, 1]} : vector<8x49xf32> to vector<8x48xf32>
    %85 = vector.extract_strided_slice %83 {offsets = [0, 48], sizes = [8, 1], strides = [1, 1]} : vector<8x49xf32> to vector<8x1xf32>
    %c0_56 = arith.constant 0 : index
    %c0_57 = arith.constant 0 : index
    %86 = vector.load %arg6[%c0_56, %c0_57] : memref<48x136xf32, #tpu.memory_space<vmem>>, vector<48x128xf32>
    %cst_58 = arith.constant dense<0.000000e+00> : vector<8x128xf32>
    %87 = tpu.matmul %84, %86, %cst_58 {dimension_numbers = #tpu.dot_dimension_numbers<[1], [0], [0], [1], [0, 0, 1, 1], [], []>} : vector<8x48xf32>, vector<48x128xf32>, vector<8x128xf32> -> vector<8x128xf32>
    %88 = vector.broadcast %85 : vector<8x1xf32> to vector<8x128xf32>
    %89 = arith.addf %87, %88 : vector<8x128xf32>
    %cst_59 = arith.constant 0.000000e+00 : f32
    %90 = vector.broadcast %cst_59 : f32 to vector<8x128xf32>
    %91 = arith.maximumf %89, %90 : vector<8x128xf32>
    %c32_60 = arith.constant 32 : index
    %c0_61 = arith.constant 0 : index
    %92 = vector.load %arg6[%c32_60, %c0_61] : memref<48x136xf32, #tpu.memory_space<vmem>>, vector<8x128xf32>
    tpu.vector_store %arg6[%c32_60, %c0_61], %91 {strides = array<i32>} : memref<48x136xf32, #tpu.memory_space<vmem>>, vector<8x128xf32>,
    %c32_62 = arith.constant 32 : index
    %c4_63 = arith.constant 4 : index
    %93 = vector.load %arg6[%c32_62, %c4_63] : memref<48x136xf32, #tpu.memory_space<vmem>>, vector<8x128xf32>
    %c12_i32_64 = arith.constant 12 : i32
    %94 = vector.broadcast %c12_i32_64 : i32 to vector<1x128xi32>
    %95 = arith.cmpi slt, %0, %94 : vector<1x128xi32>
    %cst_65 = arith.constant 0.000000e+00 : f32
    %96 = vector.shape_cast %95 : vector<1x128xi1> to vector<1x128xi1>
    %97 = vector.broadcast %96 : vector<1x128xi1> to vector<8x128xi1>
    %98 = vector.broadcast %cst_65 : f32 to vector<8x128xf32>
    %99 = arith.select %97, %93, %98 : vector<8x128xi1>, vector<8x128xf32>
    %c0_66 = arith.constant 0 : index
    %c0_67 = arith.constant 0 : index
    %100 = vector.load %arg6[%c0_66, %c0_67] : memref<48x136xf32, #tpu.memory_space<vmem>>, vector<8x128xf32>
    tpu.vector_store %arg6[%c0_66, %c0_67], %99 {strides = array<i32>} : memref<48x136xf32, #tpu.memory_space<vmem>>, vector<8x128xf32>,
    %c32_68 = arith.constant 32 : index
    %c2_69 = arith.constant 2 : index
    %101 = vector.load %arg6[%c32_68, %c2_69] : memref<48x136xf32, #tpu.memory_space<vmem>>, vector<8x128xf32>
    %c14_i32_70 = arith.constant 14 : i32
    %102 = vector.broadcast %c14_i32_70 : i32 to vector<1x128xi32>
    %103 = arith.cmpi slt, %0, %102 : vector<1x128xi32>
    %cst_71 = arith.constant 0.000000e+00 : f32
    %104 = vector.shape_cast %103 : vector<1x128xi1> to vector<1x128xi1>
    %105 = vector.broadcast %104 : vector<1x128xi1> to vector<8x128xi1>
    %106 = vector.broadcast %cst_71 : f32 to vector<8x128xf32>
    %107 = arith.select %105, %101, %106 : vector<8x128xi1>, vector<8x128xf32>
    %c16_72 = arith.constant 16 : index
    %c0_73 = arith.constant 0 : index
    %108 = vector.load %arg6[%c16_72, %c0_73] : memref<48x136xf32, #tpu.memory_space<vmem>>, vector<8x128xf32>
    tpu.vector_store %arg6[%c16_72, %c0_73], %107 {strides = array<i32>} : memref<48x136xf32, #tpu.memory_space<vmem>>, vector<8x128xf32>,
    %c32_74 = arith.constant 32 : index
    %c0_75 = arith.constant 0 : index
    %109 = vector.load %arg2[%c32_74, %c0_75] : memref<96x49xf32, #tpu.memory_space<vmem>>, vector<8x49xf32>
    %110 = vector.extract_strided_slice %109 {offsets = [0, 0], sizes = [8, 48], strides = [1, 1]} : vector<8x49xf32> to vector<8x48xf32>
    %111 = vector.extract_strided_slice %109 {offsets = [0, 48], sizes = [8, 1], strides = [1, 1]} : vector<8x49xf32> to vector<8x1xf32>
    %c0_76 = arith.constant 0 : index
    %c0_77 = arith.constant 0 : index
    %112 = vector.load %arg6[%c0_76, %c0_77] : memref<48x136xf32, #tpu.memory_space<vmem>>, vector<48x128xf32>
    %cst_78 = arith.constant dense<0.000000e+00> : vector<8x128xf32>
    %113 = tpu.matmul %110, %112, %cst_78 {dimension_numbers = #tpu.dot_dimension_numbers<[1], [0], [0], [1], [0, 0, 1, 1], [], []>} : vector<8x48xf32>, vector<48x128xf32>, vector<8x128xf32> -> vector<8x128xf32>
    %114 = vector.broadcast %111 : vector<8x1xf32> to vector<8x128xf32>
    %115 = arith.addf %113, %114 : vector<8x128xf32>
    %cst_79 = arith.constant 0.000000e+00 : f32
    %116 = vector.broadcast %cst_79 : f32 to vector<8x128xf32>
    %117 = arith.maximumf %115, %116 : vector<8x128xf32>
    %118 = arith.addf %117, %65 : vector<8x128xf32>
    %cst_80 = arith.constant 0.000000e+00 : f32
    %119 = vector.broadcast %cst_80 : f32 to vector<8x128xf32>
    %120 = arith.maximumf %118, %119 : vector<8x128xf32>
    %c32_81 = arith.constant 32 : index
    %c0_82 = arith.constant 0 : index
    %121 = vector.load %arg6[%c32_81, %c0_82] : memref<48x136xf32, #tpu.memory_space<vmem>>, vector<8x128xf32>
    tpu.vector_store %arg6[%c32_81, %c0_82], %120 {strides = array<i32>} : memref<48x136xf32, #tpu.memory_space<vmem>>, vector<8x128xf32>,
    %c32_83 = arith.constant 32 : index
    %c8_84 = arith.constant 8 : index
    %122 = vector.load %arg6[%c32_83, %c8_84] : memref<48x136xf32, #tpu.memory_space<vmem>>, vector<8x128xf32>
    %c8_i32 = arith.constant 8 : i32
    %123 = vector.broadcast %c8_i32 : i32 to vector<1x128xi32>
    %124 = arith.cmpi slt, %0, %123 : vector<1x128xi32>
    %cst_85 = arith.constant 0.000000e+00 : f32
    %125 = vector.shape_cast %124 : vector<1x128xi1> to vector<1x128xi1>
    %126 = vector.broadcast %125 : vector<1x128xi1> to vector<8x128xi1>
    %127 = vector.broadcast %cst_85 : f32 to vector<8x128xf32>
    %128 = arith.select %126, %122, %127 : vector<8x128xi1>, vector<8x128xf32>
    %c0_86 = arith.constant 0 : index
    %c0_87 = arith.constant 0 : index
    %129 = vector.load %arg6[%c0_86, %c0_87] : memref<48x136xf32, #tpu.memory_space<vmem>>, vector<8x128xf32>
    tpu.vector_store %arg6[%c0_86, %c0_87], %128 {strides = array<i32>} : memref<48x136xf32, #tpu.memory_space<vmem>>, vector<8x128xf32>,
    %c32_88 = arith.constant 32 : index
    %c4_89 = arith.constant 4 : index
    %130 = vector.load %arg6[%c32_88, %c4_89] : memref<48x136xf32, #tpu.memory_space<vmem>>, vector<8x128xf32>
    %c12_i32_90 = arith.constant 12 : i32
    %131 = vector.broadcast %c12_i32_90 : i32 to vector<1x128xi32>
    %132 = arith.cmpi slt, %0, %131 : vector<1x128xi32>
    %cst_91 = arith.constant 0.000000e+00 : f32
    %133 = vector.shape_cast %132 : vector<1x128xi1> to vector<1x128xi1>
    %134 = vector.broadcast %133 : vector<1x128xi1> to vector<8x128xi1>
    %135 = vector.broadcast %cst_91 : f32 to vector<8x128xf32>
    %136 = arith.select %134, %130, %135 : vector<8x128xi1>, vector<8x128xf32>
    %c16_92 = arith.constant 16 : index
    %c0_93 = arith.constant 0 : index
    %137 = vector.load %arg6[%c16_92, %c0_93] : memref<48x136xf32, #tpu.memory_space<vmem>>, vector<8x128xf32>
    tpu.vector_store %arg6[%c16_92, %c0_93], %136 {strides = array<i32>} : memref<48x136xf32, #tpu.memory_space<vmem>>, vector<8x128xf32>,
    %c40 = arith.constant 40 : index
    %c0_94 = arith.constant 0 : index
    %138 = vector.load %arg2[%c40, %c0_94] : memref<96x49xf32, #tpu.memory_space<vmem>>, vector<16x49xf32>
    %139 = vector.extract_strided_slice %138 {offsets = [0, 0], sizes = [16, 48], strides = [1, 1]} : vector<16x49xf32> to vector<16x48xf32>
    %140 = vector.extract_strided_slice %138 {offsets = [0, 48], sizes = [16, 1], strides = [1, 1]} : vector<16x49xf32> to vector<16x1xf32>
    %c0_95 = arith.constant 0 : index
    %c0_96 = arith.constant 0 : index
    %141 = vector.load %arg6[%c0_95, %c0_96] : memref<48x136xf32, #tpu.memory_space<vmem>>, vector<48x128xf32>
    %cst_97 = arith.constant dense<0.000000e+00> : vector<16x128xf32>
    %142 = tpu.matmul %139, %141, %cst_97 {dimension_numbers = #tpu.dot_dimension_numbers<[1], [0], [0], [1], [0, 0, 1, 1], [], []>} : vector<16x48xf32>, vector<48x128xf32>, vector<16x128xf32> -> vector<16x128xf32>
    %143 = vector.broadcast %140 : vector<16x1xf32> to vector<16x128xf32>
    %144 = arith.addf %142, %143 : vector<16x128xf32>
    %cst_98 = arith.constant 0.000000e+00 : f32
    %145 = vector.broadcast %cst_98 : f32 to vector<16x128xf32>
    %146 = arith.maximumf %144, %145 : vector<16x128xf32>
    %c32_99 = arith.constant 32 : index
    %c0_100 = arith.constant 0 : index
    %147 = vector.load %arg6[%c32_99, %c0_100] : memref<48x136xf32, #tpu.memory_space<vmem>>, vector<16x128xf32>
    tpu.vector_store %arg6[%c32_99, %c0_100], %146 {strides = array<i32>} : memref<48x136xf32, #tpu.memory_space<vmem>>, vector<16x128xf32>,
    %c32_101 = arith.constant 32 : index
    %c8_102 = arith.constant 8 : index
    %148 = vector.load %arg6[%c32_101, %c8_102] : memref<48x136xf32, #tpu.memory_space<vmem>>, vector<16x128xf32>
    %c8_i32_103 = arith.constant 8 : i32
    %149 = vector.broadcast %c8_i32_103 : i32 to vector<1x128xi32>
    %150 = arith.cmpi slt, %0, %149 : vector<1x128xi32>
    %cst_104 = arith.constant 0.000000e+00 : f32
    %151 = vector.shape_cast %150 : vector<1x128xi1> to vector<1x128xi1>
    %152 = vector.broadcast %151 : vector<1x128xi1> to vector<16x128xi1>
    %153 = vector.broadcast %cst_104 : f32 to vector<16x128xf32>
    %154 = arith.select %152, %148, %153 : vector<16x128xi1>, vector<16x128xf32>
    %c0_105 = arith.constant 0 : index
    %c0_106 = arith.constant 0 : index
    %155 = vector.load %arg6[%c0_105, %c0_106] : memref<48x136xf32, #tpu.memory_space<vmem>>, vector<16x128xf32>
    tpu.vector_store %arg6[%c0_105, %c0_106], %154 {strides = array<i32>} : memref<48x136xf32, #tpu.memory_space<vmem>>, vector<16x128xf32>,
    %c32_107 = arith.constant 32 : index
    %c4_108 = arith.constant 4 : index
    %156 = vector.load %arg6[%c32_107, %c4_108] : memref<48x136xf32, #tpu.memory_space<vmem>>, vector<16x128xf32>
    %c12_i32_109 = arith.constant 12 : i32
    %157 = vector.broadcast %c12_i32_109 : i32 to vector<1x128xi32>
    %158 = arith.cmpi slt, %0, %157 : vector<1x128xi32>
    %cst_110 = arith.constant 0.000000e+00 : f32
    %159 = vector.shape_cast %158 : vector<1x128xi1> to vector<1x128xi1>
    %160 = vector.broadcast %159 : vector<1x128xi1> to vector<16x128xi1>
    %161 = vector.broadcast %cst_110 : f32 to vector<16x128xf32>
    %162 = arith.select %160, %156, %161 : vector<16x128xi1>, vector<16x128xf32>
    %c16_111 = arith.constant 16 : index
    %c0_112 = arith.constant 0 : index
    %163 = vector.load %arg6[%c16_111, %c0_112] : memref<48x136xf32, #tpu.memory_space<vmem>>, vector<16x128xf32>
    tpu.vector_store %arg6[%c16_111, %c0_112], %162 {strides = array<i32>} : memref<48x136xf32, #tpu.memory_space<vmem>>, vector<16x128xf32>,
    %c56 = arith.constant 56 : index
    %c0_113 = arith.constant 0 : index
    %164 = vector.load %arg2[%c56, %c0_113] : memref<96x49xf32, #tpu.memory_space<vmem>>, vector<16x49xf32>
    %165 = vector.extract_strided_slice %164 {offsets = [0, 0], sizes = [16, 48], strides = [1, 1]} : vector<16x49xf32> to vector<16x48xf32>
    %166 = vector.extract_strided_slice %164 {offsets = [0, 48], sizes = [16, 1], strides = [1, 1]} : vector<16x49xf32> to vector<16x1xf32>
    %c0_114 = arith.constant 0 : index
    %c0_115 = arith.constant 0 : index
    %167 = vector.load %arg6[%c0_114, %c0_115] : memref<48x136xf32, #tpu.memory_space<vmem>>, vector<48x128xf32>
    %cst_116 = arith.constant dense<0.000000e+00> : vector<16x128xf32>
    %168 = tpu.matmul %165, %167, %cst_116 {dimension_numbers = #tpu.dot_dimension_numbers<[1], [0], [0], [1], [0, 0, 1, 1], [], []>} : vector<16x48xf32>, vector<48x128xf32>, vector<16x128xf32> -> vector<16x128xf32>
    %169 = vector.broadcast %166 : vector<16x1xf32> to vector<16x128xf32>
    %170 = arith.addf %168, %169 : vector<16x128xf32>
    %cst_117 = arith.constant 0.000000e+00 : f32
    %171 = vector.broadcast %cst_117 : f32 to vector<16x128xf32>
    %172 = arith.maximumf %170, %171 : vector<16x128xf32>
    %c72 = arith.constant 72 : index
    %c0_118 = arith.constant 0 : index
    %173 = vector.load %arg2[%c72, %c0_118] : memref<96x49xf32, #tpu.memory_space<vmem>>, vector<16x49xf32>
    %174 = vector.extract_strided_slice %173 {offsets = [0, 0], sizes = [16, 8], strides = [1, 1]} : vector<16x49xf32> to vector<16x8xf32>
    %175 = vector.extract_strided_slice %173 {offsets = [0, 48], sizes = [16, 1], strides = [1, 1]} : vector<16x49xf32> to vector<16x1xf32>
    %cst_119 = arith.constant dense<0.000000e+00> : vector<16x128xf32>
    %176 = tpu.matmul %174, %120, %cst_119 {dimension_numbers = #tpu.dot_dimension_numbers<[1], [0], [0], [1], [0, 0, 1, 1], [], []>} : vector<16x8xf32>, vector<8x128xf32>, vector<16x128xf32> -> vector<16x128xf32>
    %177 = vector.broadcast %175 : vector<16x1xf32> to vector<16x128xf32>
    %178 = arith.addf %176, %177 : vector<16x128xf32>
    %179 = arith.addf %172, %178 : vector<16x128xf32>
    %cst_120 = arith.constant 0.000000e+00 : f32
    %180 = vector.broadcast %cst_120 : f32 to vector<16x128xf32>
    %181 = arith.maximumf %179, %180 : vector<16x128xf32>
    %cst_121 = arith.constant 0.000000e+00 : f32
    %182 = vector.broadcast %cst_121 : f32 to vector<16x128xf32>
    %183 = arith.maximumf %181, %182 : vector<16x128xf32>
    %c0_122 = arith.constant 0 : index
    %c0_123 = arith.constant 0 : index
    %184 = vector.load %arg4[%c0_122, %c0_123] : memref<128x8xf32, #tpu.memory_space<vmem>>, vector<128x8xf32>
    %cst_124 = arith.constant dense<0.000000e+00> : vector<16x8xf32>
    %185 = tpu.matmul %183, %184, %cst_124 {dimension_numbers = #tpu.dot_dimension_numbers<[1], [0], [0], [1], [0, 0, 1, 1], [], []>} : vector<16x128xf32>, vector<128x8xf32>, vector<16x8xf32> -> vector<16x8xf32>
    %c88 = arith.constant 88 : index
    %c0_125 = arith.constant 0 : index
    %186 = vector.load %arg2[%c88, %c0_125] : memref<96x49xf32, #tpu.memory_space<vmem>>, vector<5x49xf32>
    %187 = vector.extract_strided_slice %186 {offsets = [0, 0], sizes = [5, 16], strides = [1, 1]} : vector<5x49xf32> to vector<5x16xf32>
    %188 = vector.extract_strided_slice %186 {offsets = [0, 48], sizes = [5, 1], strides = [1, 1]} : vector<5x49xf32> to vector<5x1xf32>
    %cst_126 = arith.constant dense<0.000000e+00> : vector<5x8xf32>
    %189 = tpu.matmul %187, %185, %cst_126 {dimension_numbers = #tpu.dot_dimension_numbers<[1], [0], [0], [1], [0, 0, 1, 1], [], []>} : vector<5x16xf32>, vector<16x8xf32>, vector<5x8xf32> -> vector<5x8xf32>
    %190 = vector.broadcast %188 : vector<5x1xf32> to vector<5x8xf32>
    %191 = arith.addf %189, %190 : vector<5x8xf32>
    %c0_127 = arith.constant 0 : index
    %c0_128 = arith.constant 0 : index
    %c0_129 = arith.constant 0 : index
    %192 = vector.load %arg5[%c0_127, %c0_128, %c0_129] : memref<1x5x8xf32, #tpu.memory_space<vmem>>, vector<1x5x8xf32>
    %193 = vector.shape_cast %192 : vector<1x5x8xf32> to vector<5x8xf32>
    %194 = vector.shape_cast %191 : vector<5x8xf32> to vector<1x5x8xf32>
    tpu.vector_store %arg5[%c0_127, %c0_128, %c0_129], %194 {strides = array<i32>} : memref<1x5x8xf32, #tpu.memory_space<vmem>>, vector<1x5x8xf32>,
    return
  }
  func.func @transform_0(%arg0: i32) -> (i32, i32, i32) {
    %c0_i32 = arith.constant 0 : i32
    %c0_i32_0 = arith.constant 0 : i32
    %c0_i32_1 = arith.constant 0 : i32
    return %arg0, %c0_i32, %c0_i32_0 : i32, i32, i32
  }
  func.func @transform_1(%arg0: i32) -> (i32, i32) {
    %c0_i32 = arith.constant 0 : i32
    %c0_i32_0 = arith.constant 0 : i32
    %c0_i32_1 = arith.constant 0 : i32
    return %c0_i32, %c0_i32_0 : i32, i32
  }
  func.func @transform_2(%arg0: i32) -> (i32, i32) {
    %c0_i32 = arith.constant 0 : i32
    %c0_i32_0 = arith.constant 0 : i32
    %c0_i32_1 = arith.constant 0 : i32
    return %c0_i32, %c0_i32_0 : i32, i32
  }
  func.func @transform_3(%arg0: i32) -> (i32, i32) {
    %c0_i32 = arith.constant 0 : i32
    %c0_i32_0 = arith.constant 0 : i32
    %c0_i32_1 = arith.constant 0 : i32
    return %c0_i32, %c0_i32_0 : i32, i32
  }
  func.func @transform_4(%arg0: i32) -> (i32, i32, i32) {
    %c0_i32 = arith.constant 0 : i32
    %c0_i32_0 = arith.constant 0 : i32
    %c0_i32_1 = arith.constant 0 : i32
    return %arg0, %c0_i32, %c0_i32_0 : i32, i32, i32
  }
}

</mosaic_0001>

<bundles_post_ra>
// kernel: tcn_forward.1
= control target key start
LH: loop header
LB: loop body
LE: loop exit
PB: predicated region body
PF: predicated region fallthrough
CT: control target
= control target key end

     0   :  { %s1796_s15 = smov 0   ;;  %s2120_s0 = inlined_call_operand.vmem [shape: f32[2,4,128], index: 0, kind: input, shape index: {}]   ;;  %s2121_s1 = inlined_call_operand.vmem [shape: f32[96,49], index: 1, kind: input, shape index: {}]   ;;  %s2122_s2 = inlined_call_operand.vmem [shape: s32[1,128], index: 2, kind: input, shape index: {}]   ;;  %s2123_s3 = inlined_call_operand.vmem [shape: f32[128,8], index: 3, kind: input, shape index: {}]   ;;  %s2124_s4 = inlined_call_operand.vmem [shape: f32[2,5,8], index: 4, kind: output, shape index: {}]  }
   0x1 LB: > { %s1363_s16 = sadd.s32 4294967295, %s1759_s15   ;;  %p1367_p0 = scmp.ge.s32.totalorder %s1759_s15, 1  ;;  %s1759_s15 = sphi %s1796_s15, %s14_s15  }
   0x2   : > { %p161_p1 = scmp.lt.s32.totalorder %s1759_s15, 3 }
   0x4   : > { %p162_p2 = pnand %p1367_p0, %p161_p1 }
   0x5   : > { %p185_p3 = scmp.lt.s32.totalorder (!%p162_p2), %s1363_s16, 1  ;;  %vm195_vm0 = vcmask (!%p162_p2), 64512   ;;  %v1761_v0 = vmov (!%p162_p2), 0.0   ;;  %v1762_v2 = vmov (!%p162_p2), 0.0|0.0   ;;  %s1763_s21 = smov (!%p162_p2), 127   ;;  %vm1765_vm1 = vmmov (!%p162_p2), 0  }
   0x6   : > { %165 = sbr.rel (%p162_p2) target bundleno = 2568 (0xa08), region = 36  ;;  %203 = vst [vmem:[#allocation2 + $0x40] sm:$0xff] (!%p162_p2), %v1761_v0  ;;  %194 = vst [vmem:[#allocation2] sm:$0xff] (!%p162_p2), %v1761_v0  ;;  %1485 = vmatprep.subr.mxu0 (!%p162_p2), %v1761_v0  ;;  %1597 = vmatprep.subr.bf16.mxu1 (!%p162_p2), %v1762_v2  ;;  %s1764_s22 = smov (!%p162_p2), 126   ;;  %v249_v7 = vld [vmem:[%s2121_s1] sm:$0xff] (!%p162_p2)  ;;  %v1766_v8 = vmov (!%p162_p2), 48   ;;  %v213_v9 = vlaneseq (!%p162_p2) }
   0x7   : > { %199 = vst [vmem:[#allocation2 + $0x20] sm:$0xff] (!%p162_p2), %v1761_v0  ;;  %204 = vst.msk [vmem:[#allocation2 + $0x48] sm:$0xff] (!%p162_p2), %vm195_vm0, %v1761_v0  ;;  %1467 = vmatprep.mubr.msk.f32.mxu1 (!%p162_p2), %vm1765_vm1, %v1761_v0  ;;  %1487 = vmatprep.mubr.msk.f32.mxu0 (!%p162_p2), %vm1765_vm1, %v1761_v0  ;;  %v1836_v10 = vld [vmem:[%s2122_s2] sm:$0x1] (!%p162_p2)  ;;  %v1767_v13 = vmov (!%p162_p2), 0   ;;  %vm244_vm4 = vcmask (!%p162_p2), 1039360  }
   0x8   : > { %206 = vst.msk [vmem:[#allocation2 + $0x58] sm:$0xff] (!%p162_p2), %vm195_vm0, %v1761_v0  ;;  %1709 = vset.pattern.permute.xlu0 (!%p162_p2), %v1766_v8  ;;  %1710 = vset.pattern.permute.xlu1 (!%p162_p2), %v1766_v8  ;;  %v214_v11 = vshrl.u32 (!%p162_p2), %v213_v9, 7  ;;  %vm231_vm2 = vcmp.lt.s32.totalorder (!%p162_p2), %v1836_v10, 15  ;;  %vm211_vm3 = vcmp.lt.s32.totalorder (!%p162_p2), %v1836_v10, 14  ;;  %vm224_vm5 = vcmask (!%p162_p2), 1031168   ;;  %v360_v40 = vld [vmem:[%s2121_s1 + $0x8] sm:$0xff] (!%p162_p2) }
   0x9   : > { %v232_v14 = vsel (!%p162_p2), %vm231_vm2, 1, %v1767_v13  ;;  %v212_v15 = vsel (!%p162_p2), %vm211_vm3, 1, %v1767_v13  ;;  %vm261_vm8 = vcmask (!%p162_p2), 392192   ;;  %vm454_vm9 = vcmask (!%p162_p2), 1043456   ;;  %v445_v41 = vld [vmem:[%s2121_s1 + $0x10] sm:$0xff] (!%p162_p2)  ;;  %s1769_s5 = smov (!%p162_p2), 124  }
   0xa   : > { %v1840_v12 = vsub.s32 (!%p162_p2), 0, %v214_v11  ;;  %vm451_vm10 = vcmask (!%p162_p2), 31744   ;;  %vm1768_vm11 = vmmov (!%p162_p2), 1   ;;  %v563_v63 = vld [vmem:[%s2121_s1 + $0x18] sm:$0xff] (!%p162_p2)  ;;  %vm533_vm14 = vcmp.lt.s32.totalorder (!%p162_p2), %v1836_v10, 12  ;;  %s1770_s10 = smov (!%p162_p2), 120  }
   0xb   : > { %vm546_vm15 = vcmask (!%p162_p2), 1014784  }
   0xc   : > { %v236_v16 = vrot.slane (!%p162_p2), %v232_v14, %v1840_v12  ;;  %v216_v17 = vrot.slane (!%p162_p2), %v212_v15, %v1840_v12 }
   0xd   : > { %s2138_s16 = smov (!%p185_p3, %s1363_s16), 1 }
   0xe   : > { %s1368_s17 = sshll.u32 %s2138_s16, 2  ;;  %v230_v5 = vld [vmem:[#allocation2 + $0x48] sm:$0xf]  ;;  %vm1846_vm6 = vcmp.eq.s32.totalorder %v236_v16, 1  ;;  %vm1850_vm7 = vcmp.eq.s32.totalorder %v216_v17, 1  ;;  %s1369_s9 = sshll.u32 %s2138_s16, 3 }
   0xf   : > { %s188_s20 = scalar_lea.vmem %s2120_s0, %s1368_s17  ;;  %v210_v6 = vld [vmem:[#allocation2 + $0x48] sm:$0xf]  ;;  %vm1892_vm12 = vmpackc.low %vm1768_vm11, %vm1850_vm7  ;;  %s192_s12 = scalar_lea.vmem %s2124_s4, %s1369_s9 }
  0x10   : > { %v1818_v1 = vld [vmem:[%s188_s20] sm:$0xf]  ;;  %v1869_v34 = vld [vmem:[#allocation2 + $0x48] sm:$0xff]  ;;  %vm1714_vm13 = vmpackc.low %vm1768_vm11, %vm1846_vm6 }
  0x11   : > { %208 = vst [vmem:[#allocation2 + $0x40] sm:$0xf] %v1818_v1  ;;  %1486 = vmatpush3.msk.msra.mxu0 %vm454_vm9, %v1818_v1  ;;  %v534_v1 = vsel %vm533_vm14, 1, %v1767_v13  ;;  %vm1308_vm9 = vcmask 61440  }
  0x12   : > { %1488 = vmatmul.mubr.msk.f32.vlgmr.msra.gmra.mrb[0].mxu0 %vm451_vm10, %v445_v41  ;;  %1624 = vmatprep.subr.bf16.mxu0 %v1762_v2 }
  0x13   : > { %1517 = vmatprep.mubr.msk.f32.mxu0 %vm1765_vm1, %v1761_v0 }
  0x18   : > { %v229_v3 = vld [vmem:[#allocation2 + $0x40] sm:$0xf] }
  0x19   : > { %v209_v4 = vld [vmem:[#allocation2 + $0x40] sm:$0xf]  ;;  %240 = vrot.lane.b32.xlu1 %v229_v3, %s1763_s21  ;;  %v538_v3 = vrot.slane %v534_v1, %v1840_v12 }
  0x1a   : > { %220 = vrot.lane.b32.xlu0 %v209_v4, %s1764_s22  ;;  %v254_v31 = vld [vmem:[#allocation2 + $0x40] sm:$0xff] }
  0x1b   : > { %v1604_v33 = vpack.c.bf16 %v1761_v0, %v254_v31  ;;  %vm1930_vm2 = vcmp.eq.s32.totalorder %v538_v3, 1  ;;  %v2043_v3 = vld [vmem:[%s2121_s1 + $0x58] sm:$0x1f] }
  0x1c   : > { %vm1939_vm3 = vmpackc.low %vm1768_vm11, %vm1930_vm2 }
  0x1d   : > { %242 = vrot.lane.b32.xlu1 %v230_v5, %s1763_s21  ;;  %v1142_v5 = vld [vmem:[%s2123_s3 + $0x20] sm:$0xff] }
  0x1e   : > { %222 = vrot.lane.b32.xlu0 %v210_v6, %s1764_s22 }
  0x21   : > { %342 = vrot.lane.b32.xlu1 %v1869_v34, %s1764_s22 }
  0x22   : > { %258 = vperm.xlu0 %1709, %v249_v7  }
  0x8b   : > { %v241_v18 = vpop.permute.xlu1 %240 }
  0x8c   : > { %v221_v19 = vpop.permute.xlu0 %220 }
  0x8f   : > { %v243_v22 = vpop.permute.xlu1 %242 }
  0x90   : > { %v223_v23 = vpop.permute.xlu0 %222  ;;  %v245_v24 = vsel %vm244_vm4, %v241_v18, %v243_v22 }
  0x91   : > { %v225_v25 = vsel %vm224_vm5, %v221_v19, %v223_v23  ;;  %v247_v26 = vsel %vm1846_vm6, %v245_v24, 0.0  ;;  %v673_v23 = vld [vmem:[%s2121_s1 + $0x20] sm:$0xff]  ;;  %v794_v24 = vld [vmem:[%s2121_s1 + $0x30] sm:$0xff] }
  0x92   : > { %v227_v27 = vsel %vm1850_vm7, %v225_v25, 0.0  ;;  %248 = vst [vmem:[#allocation2 + $0x20] sm:$0xf] %v247_v26  ;;  %v897_v25 = vld [vmem:[#allocation2 + $0x58] sm:$0xff]  ;;  %v1975_v26 = vld [vmem:[%s2121_s1 + $0x40] sm:$0xff] }
  0x93   : > { %228 = vst [vmem:[#allocation2] sm:$0xf] %v227_v27  ;;  %v343_v42 = vpop.permute.xlu1 %342  ;;  %v1042_v27 = vld [vmem:[%s2121_s1 + $0x50] sm:$0xff] }
  0x99   : > { %v252_v30 = vld [vmem:[#allocation2 + $0x20] sm:$0xff] }
  0x9a   : > { %v250_v28 = vld [vmem:[#allocation2] sm:$0xff]  ;;  %v1601_v32 = vpack.c.bf16 %v1761_v0, %v252_v30 }
  0x9b   : > { %v1598_v29 = vpack.c.bf16 %v1761_v0, %v250_v28 }
  0x9d   : > { %1599 = vmatpush3.bf16.msra.mxu1 %v1598_v29 }
  0x9e   : > { %1600 = vmatprep.subr.bf16.mxu1 %v1762_v2 }
  0xa1   : > { %1602 = vmatpush3.bf16.msra.mxu1 %v1601_v32  ;;  %v259_v35 = vpop.permute.xlu0 %258 }
  0xa2   : > { %1603 = vmatprep.subr.bf16.mxu1 %v1762_v2 }
  0xa5   : > { %1605 = vmatpush3.bf16.msra.mxu1 %v1604_v33 }
  0xa6   : > { %1606 = vmatprep.subr.bf16.mxu1 %v1762_v2 }
  0xa8   : > { %1468 = vmatmul.mubr.msk.f32.vlgmr.msra.gmra.mrb[0].mxu1 %vm261_vm8, %v249_v7 }
  0xa9   : > { %1482 = vmatprep.mubr.msk.f32.mxu1 %vm1765_vm1, %v1761_v0 }
  0xe5   : > { %v524_v52 = vpop.f32.mrb[0].mxu0 }
  0xe6   : > { %v1489_v53 = vpop.f32.mrb[1].mxu0 }
 0x17b   : > { %v330_v36 = vpop.f32.mrb[0].mxu1 }
 0x17c   : > { %v331_v37 = vadd.f32 %v330_v36, %v259_v35  ;;  %v1469_v38 = vpop.f32.mrb[1].mxu1 }
 0x17e   : > { %v334_v39 = vmax.f32 %v331_v37, 0.0  ;;  %v793_v37 = vld [vmem:[%s2121_s1 + $0x28] sm:$0xff] }
 0x180   : > { %352 = vrot.lane.b32.xlu0 %v334_v39, %s1763_s21  ;;  %340 = vrot.lane.b32.xlu1 %v334_v39, %s1764_s22  ;;  %v1613_v51 = vpack.c.bf16 %v1761_v0, %v334_v39 }
 0x184   : > { %369 = vperm.xlu0 %1709, %v360_v40   ;;  %354 = vrot.lane.b32.xlu1 %v1869_v34, %s1763_s21 }
 0x188   : > { %448 = vperm.xlu1 %1710, %v445_v41  }
 0x18c   : > { %544 = vrot.lane.b32.xlu1 %v1869_v34, %s1769_s5 }
 0x190   : > { %557 = vrot.lane.b32.xlu1 %v1869_v34, %s1764_s22 }
 0x1f2   : > { %v341_v43 = vpop.permute.xlu1 %340  ;;  %v353_v45 = vpop.permute.xlu0 %352 }
 0x1f3   : > { %v344_v44 = vsel %vm224_vm5, %v341_v43, %v343_v42 }
 0x1f4   : > { %v1712_v49 = vpack.c.bf16 %v1761_v0, %v344_v44 }
 0x1f6   : > { %v355_v46 = vpop.permute.xlu1 %354  ;;  %1713 = vmatpush3.bf16.msk.msra.mxu1 %vm1892_vm12, %v1712_v49 }
 0x1f7   : > { %v356_v47 = vsel %vm244_vm4, %v353_v45, %v355_v46  ;;  %1609 = vmatprep.subr.bf16.mxu1 %v1762_v2  ;;  %vm763_vm4 = vcmp.lt.s32.totalorder %v1836_v10, 8 }
 0x1f8   : > { %v1715_v50 = vpack.c.bf16 %v1761_v0, %v356_v47  ;;  %v764_v45 = vsel %vm763_vm4, 1, %v1767_v13 }
 0x1f9   : > { %v768_v46 = vrot.slane %v764_v45, %v1840_v12  ;;  %v1153_v45 = vld [vmem:[%s2123_s3 + $0x78] sm:$0xff] }
 0x1fa   : > { %1716 = vmatpush3.bf16.msk.msra.mxu1 %vm1714_vm13, %v1715_v50 }
 0x1fb   : > { %1612 = vmatprep.subr.bf16.mxu1 %v1762_v2  ;;  %vm2003_vm6 = vcmp.eq.s32.totalorder %v768_v46, 1 }
 0x1fc   : > { %vm1729_vm7 = vmpackc.low %vm1768_vm11, %vm2003_vm6 }
 0x1fe   : > { %1614 = vmatpush3.bf16.msra.mxu1 %v1613_v51 }
 0x1ff   : > { %1615 = vmatprep.subr.bf16.mxu1 %v1762_v2 }
 0x201   : > { %1483 = vmatmul.mubr.msk.f32.vlgmr.msra.gmra.mrb[2].mxu1 %vm261_vm8, %v360_v40 }
 0x202   : > { %1502 = vmatprep.mubr.msk.f32.mxu1 %vm1765_vm1, %v1761_v0 }
 0x203   : > { %v370_v55 = vpop.permute.xlu0 %369 }
 0x207   : > { %v449_v54 = vpop.permute.xlu1 %448 }
 0x208   : > { %v525_v59 = vadd.f32 %v524_v52, %v449_v54  ;;  %v1041_v54 = vld [vmem:[%s2121_s1 + $0x48] sm:$0xff] }
 0x20b   : > { %v545_v4 = vpop.permute.xlu1 %544 }
 0x20f   : > { %v558_v8 = vpop.permute.xlu1 %557 }
 0x2d4   : > { %v440_v56 = vpop.f32.mrb[2].mxu1 }
 0x2d5   : > { %v441_v57 = vadd.f32 %v440_v56, %v370_v55  ;;  %v1484_v58 = vpop.f32.mrb[3].mxu1  ;;  %v942_v55 = vld [vmem:[%s2121_s1 + $0x38] sm:$0xff] }
 0x2d7   : > { %v444_v60 = vmax.f32 %v441_v57, 0.0 }
 0x2d9   : > { %v528_v61 = vadd.f32 %v525_v59, %v444_v60 }
 0x2db   : > { %v1914_v62 = vmax.f32 %v528_v61, 0.0 }
 0x2dd   : > { %542 = vrot.lane.b32.xlu0 %v1914_v62, %s1769_s5  ;;  %v1622_v17 = vpack.c.bf16 %v1761_v0, %v1914_v62 }
 0x2e1   : > { %555 = vrot.lane.b32.xlu0 %v1914_v62, %s1764_s22 }
 0x2e5   : > { %572 = vperm.xlu0 %1709, %v563_v63  }
 0x2e9   : > { %655 = vrot.lane.b32.xlu0 %v1869_v34, %s1769_s5 }
 0x2ed   : > { %667 = vrot.lane.b32.xlu0 %v1869_v34, %s1764_s22 }
 0x34f   : > { %v543_v6 = vpop.permute.xlu0 %542 }
 0x350   : > { %v547_v7 = vsel %vm546_vm15, %v543_v6, %v545_v4 }
 0x351   : > { %v1718_v15 = vpack.c.bf16 %v1761_v0, %v547_v7 }
 0x353   : > { %v556_v9 = vpop.permute.xlu0 %555  ;;  %1719 = vmatpush3.bf16.msk.msra.mxu1 %vm1939_vm3, %v1718_v15 }
 0x354   : > { %v559_v11 = vsel %vm224_vm5, %v556_v9, %v558_v8  ;;  %1618 = vmatprep.subr.bf16.mxu1 %v1762_v2 }
 0x355   : > { %v1721_v16 = vpack.c.bf16 %v1761_v0, %v559_v11 }
 0x357   : > { %1722 = vmatpush3.bf16.msk.msra.mxu1 %vm1892_vm12, %v1721_v16 }
 0x358   : > { %1621 = vmatprep.subr.bf16.mxu1 %v1762_v2 }
 0x35b   : > { %1623 = vmatpush3.bf16.msra.mxu1 %v1622_v17 }
 0x35e   : > { %1503 = vmatmul.mubr.msk.f32.vlgmr.msra.gmra.mrb[4].mxu1 %vm261_vm8, %v563_v63 }
 0x35f   : > { %1532 = vmatprep.mubr.msk.f32.mxu1 %vm261_vm8, %v793_v37 }
 0x364   : > { %v573_v18 = vpop.permute.xlu0 %572 }
 0x368   : > { %v656_v28 = vpop.permute.xlu0 %655 }
 0x36c   : > { %v668_v31 = vpop.permute.xlu0 %667 }
 0x431   : > { %v643_v19 = vpop.f32.mrb[4].mxu1 }
 0x432   : > { %v644_v20 = vadd.f32 %v643_v19, %v573_v18  ;;  %v1504_v21 = vpop.f32.mrb[5].mxu1 }
 0x434   : > { %v647_v22 = vmax.f32 %v644_v20, 0.0 }
 0x436   : > { %653 = vrot.lane.b32.xlu1 %v647_v22, %s1769_s5  ;;  %v1631_v36 = vpack.c.bf16 %v1761_v0, %v647_v22 }
 0x43a   : > { %665 = vrot.lane.b32.xlu1 %v647_v22, %s1764_s22 }
 0x43e   : > { %682 = vperm.xlu1 %1710, %v673_v23  }
 0x442   : > { %774 = vrot.lane.b32.xlu1 %v1869_v34, %s1770_s10 }
 0x446   : > { %787 = vrot.lane.b32.xlu1 %v1869_v34, %s1769_s5 }
 0x44a   : > { %808 = vperm.xlu1 %1710, %v794_v24  }
 0x44e   : > { %904 = vrot.lane.b32.xlu1 %v1869_v34, %s1770_s10 }
 0x452   : > { %908 = vrot.lane.b32.xlu1 %v897_v25, %s1770_s10 }
 0x456   : > { %928 = vrot.lane.b32.xlu1 %v1869_v34, %s1769_s5 }
 0x45a   : > { %932 = vrot.lane.b32.xlu1 %v897_v25, %s1769_s5 }
 0x45e   : > { %957 = vperm.xlu1 %1710, %v1975_v26  }
 0x462   : > { %1050 = vperm.xlu1 %1710, %v1042_v27  }
 0x4a8   : > { %v654_v29 = vpop.permute.xlu1 %653 }
 0x4a9   : > { %v657_v30 = vsel %vm546_vm15, %v654_v29, %v656_v28  ;;  %v1140_v28 = vld [vmem:[%s2123_s3 + $0x10] sm:$0xff]  ;;  %v1141_v29 = vld [vmem:[%s2123_s3 + $0x18] sm:$0xff] }
 0x4aa   : > { %v1724_v34 = vpack.c.bf16 %v1761_v0, %v657_v30  ;;  %v1661_v30 = vpack.c.bf16 %v1141_v29, %v1140_v28 }
 0x4ac   : > { %v666_v32 = vpop.permute.xlu1 %665  ;;  %1725 = vmatpush3.bf16.msk.msra.mxu0 %vm1939_vm3, %v1724_v34  ;;  %v1145_v34 = vld [vmem:[%s2123_s3 + $0x38] sm:$0xff] }
 0x4ad   : > { %v669_v33 = vsel %vm224_vm5, %v666_v32, %v668_v31  ;;  %1627 = vmatprep.subr.bf16.mxu0 %v1762_v2  ;;  %vm776_vm5 = vcmask 982016   ;;  %v1143_v31 = vld [vmem:[%s2123_s3 + $0x28] sm:$0xff] }
 0x4ae   : > { %v1727_v35 = vpack.c.bf16 %v1761_v0, %v669_v33  ;;  %v1665_v32 = vpack.c.bf16 %v1143_v31, %v1142_v5  ;;  %v1144_v33 = vld [vmem:[%s2123_s3 + $0x30] sm:$0xff] }
 0x4b0   : > { %1728 = vmatpush3.bf16.msk.msra.mxu0 %vm1892_vm12, %v1727_v35  ;;  %v1669_v35 = vpack.c.bf16 %v1145_v34, %v1144_v33 }
 0x4b1   : > { %1630 = vmatprep.subr.bf16.mxu0 %v1762_v2 }
 0x4b4   : > { %1632 = vmatpush3.bf16.msra.mxu0 %v1631_v36  ;;  %v1146_v36 = vld [vmem:[%s2123_s3 + $0x40] sm:$0xff] }
 0x4b7   : > { %1518 = vmatmul.mubr.msk.f32.vlgmr.msra.gmra.mrb[2].mxu0 %vm261_vm8, %v673_v23  ;;  %v1138_v23 = vld [vmem:[%s2123_s3] sm:$0xff] }
 0x4b8   : > { %1547 = vmatprep.mubr.msk.f32.mxu0 %vm261_vm8, %v942_v55 }
 0x4bd   : > { %v683_v38 = vpop.permute.xlu1 %682 }
 0x4c1   : > { %v775_v47 = vpop.permute.xlu1 %774 }
 0x4c5   : > { %v788_v51 = vpop.permute.xlu1 %787 }
 0x4c9   : > { %v809_v56 = vpop.permute.xlu1 %808 }
 0x4cd   : > { %v905_v4 = vpop.permute.xlu1 %904 }
 0x4d1   : > { %v909_v6 = vpop.permute.xlu1 %908 }
 0x4d5   : > { %v929_v14 = vpop.permute.xlu1 %928 }
 0x4d9   : > { %v933_v20 = vpop.permute.xlu1 %932 }
 0x4dd   : > { %v958_v48 = vpop.permute.xlu1 %957 }
 0x58a   : > { %v753_v39 = vpop.f32.mrb[2].mxu0 }
 0x58b   : > { %v754_v40 = vadd.f32 %v753_v39, %v683_v38  ;;  %v1519_v41 = vpop.f32.mrb[3].mxu0  ;;  %v1148_v38 = vld [vmem:[%s2123_s3 + $0x50] sm:$0xff]  ;;  %v1149_v39 = vld [vmem:[%s2123_s3 + $0x58] sm:$0xff] }
 0x58c   : > { %v1150_v41 = vld [vmem:[%s2123_s3 + $0x60] sm:$0xff] }
 0x58d   : > { %v757_v42 = vmax.f32 %v754_v40, 0.0  ;;  %v1677_v40 = vpack.c.bf16 %v1149_v39, %v1148_v38 }
 0x58f   : > { %v758_v43 = vadd.f32 %v757_v42, %v1914_v62  ;;  %v1151_v42 = vld [vmem:[%s2123_s3 + $0x68] sm:$0xff] }
 0x591   : > { %v759_v44 = vmax.f32 %v758_v43, 0.0  ;;  %v1681_v43 = vpack.c.bf16 %v1151_v42, %v1150_v41 }
 0x593   : > { %772 = vrot.lane.b32.xlu0 %v759_v44, %s1770_s10  ;;  %v1641_v13 = vpack.c.bf16 %v1761_v0, %v759_v44 }
 0x597   : > { %785 = vrot.lane.b32.xlu0 %v759_v44, %s1769_s5 }
 0x59b   : > { %803 = vperm.xlu0 %1709, %v793_v37  }
 0x605   : > { %v773_v49 = vpop.permute.xlu0 %772 }
 0x606   : > { %v777_v50 = vsel %vm776_vm5, %v773_v49, %v775_v47 }
 0x607   : > { %v1730_v10 = vpack.c.bf16 %v1761_v0, %v777_v50 }
 0x609   : > { %v786_v52 = vpop.permute.xlu0 %785  ;;  %1731 = vmatprep.subr.msk.bf16.mxu1 %vm1729_vm7, %v1730_v10 }
 0x60a   : > { %v789_v53 = vsel %vm546_vm15, %v786_v52, %v788_v51  ;;  %1734 = vmatpush3.bf16.msk.msra.mxu1 %vm1729_vm7, %v1730_v10 }
 0x60b   : > { %v1736_v12 = vpack.c.bf16 %v1761_v0, %v789_v53  ;;  %v1051_v53 = vpop.permute.xlu1 %1050 }
 0x60d   : > { %1737 = vmatprep.subr.msk.bf16.mxu1 %vm1939_vm3, %v1736_v12 }
 0x60e   : > { %1740 = vmatpush3.bf16.msk.msra.mxu1 %vm1939_vm3, %v1736_v12 }
 0x60f   : > { %1642 = vmatprep.subr.bf16.mxu1 %v1641_v13 }
 0x612   : > { %1644 = vmatpush3.bf16.msra.mxu1 %v1641_v13 }
 0x613   : > { %1550 = vmatprep.subr.mxu1 %v759_v44 }
 0x615   : > { %1533 = vmatmul.mubr.msk.f32.vlgmr.msra.gmra.mrb[6].mxu1 %vm261_vm8, %v794_v24  ;;  %v1139_v24 = vld [vmem:[%s2123_s3 + $0x8] sm:$0xff] }
 0x616   : > { %1551 = vmatpush3.msra.mxu1 %v759_v44  ;;  %1552 = vmatprep.mubr.msk.f32.mxu1 %vm195_vm0, %v1041_v54  ;;  %v1152_v44 = vld [vmem:[%s2123_s3 + $0x70] sm:$0xff] }
 0x617   : > { %1689 = vmatprep.subr.bf16.mxu1 %v1762_v2  ;;  %v1685_v46 = vpack.c.bf16 %v1153_v45, %v1152_v44 }
 0x619   : > { %1553 = vmatmul.mubr.msk.f32.vlgmr.msra.gmra.mrb[8].mxu1 %vm195_vm0, %v1042_v27  ;;  %vm1741_vm0 = vmpackc.low %vm2003_vm6, %vm2003_vm6  ;;  %v1657_v27 = vpack.c.bf16 %v1139_v24, %v1138_v23 }
 0x61a   : > { %1594 = vmatprep.mubr.msk.f32.mxu1 %vm1765_vm1, %v1761_v0  ;;  %v804_v58 = vpop.permute.xlu0 %803  ;;  %vm1747_vm1 = vmpackc.low %vm1930_vm2, %vm1930_vm2 }
 0x6e8   : > { %v1534_v57 = vpop.f32.mrb[6].mxu1 }
 0x6e9   : > { %v887_v59 = vadd.f32 %v1534_v57, %v809_v56  ;;  %v881_v60 = vpop.f32.mrb[7].mxu1 }
 0x6ea   : > { %v882_v61 = vadd.f32 %v881_v60, %v804_v58 }
 0x6eb   : > { %v891_v62 = vmax.f32 %v887_v59, 0.0 }
 0x6ec   : > { %v890_v63 = vmax.f32 %v882_v61, 0.0  ;;  %v2032_v2 = vpop.f32.mrb[8].mxu1 }
 0x6ed   : > { %906 = vrot.lane.b32.xlu0 %v891_v62, %s1770_s10  ;;  %v2038_v1 = vpop.f32.mrb[9].mxu1  ;;  %v1129_v12 = vadd.f32 %v2032_v2, %v1051_v53 }
 0x6ee   : > { %892 = vst [vmem:[#allocation2 + $0x40] sm:$0xff] %v890_v63  ;;  %v1653_v0 = vpack.c.bf16 %v891_v62, %v890_v63 }
 0x6f1   : > { %902 = vrot.lane.b32.xlu0 %v890_v63, %s1770_s10 }
 0x6f5   : > { %926 = vrot.lane.b32.xlu0 %v890_v63, %s1769_s5 }
 0x6f9   : > { %930 = vrot.lane.b32.xlu0 %v891_v62, %s1769_s5 }
 0x6fd   : > { %952 = vperm.xlu0 %1709, %v942_v55  }
 0x701   : > { %1045 = vperm.xlu0 %1709, %v1041_v54  }
 0x705   : > { %1232 = vperm.xlu0 %1709, %v2043_v3  }
 0x75f   : > { %v907_v7 = vpop.permute.xlu0 %906 }
 0x760   : > { %v911_v8 = vsel %vm776_vm5, %v907_v7, %v909_v6 }
 0x763   : > { %v903_v9 = vpop.permute.xlu0 %902 }
 0x764   : > { %v910_v11 = vsel %vm776_vm5, %v903_v9, %v905_v4 }
 0x765   : > { %v914_v15 = vsel %vm2003_vm6, %v910_v11, 0.0  ;;  %v1742_v18 = vpack.c.bf16 %v911_v8, %v910_v11 }
 0x766   : > { %916 = vst [vmem:[#allocation2] sm:$0xff] %v914_v15 }
 0x767   : > { %v927_v16 = vpop.permute.xlu0 %926  ;;  %1743 = vmatprep.subr.msk.bf16.mxu0 %vm1741_vm0, %v1742_v18 }
 0x768   : > { %v934_v17 = vsel %vm546_vm15, %v927_v16, %v929_v14  ;;  %1746 = vmatpush3.bf16.msk.msra.mxu0 %vm1741_vm0, %v1742_v18 }
 0x769   : > { %v938_v19 = vsel %vm1930_vm2, %v934_v17, 0.0 }
 0x76a   : > { %940 = vst [vmem:[#allocation2 + $0x20] sm:$0xff] %v938_v19 }
 0x76b   : > { %v931_v21 = vpop.permute.xlu0 %930 }
 0x76c   : > { %v935_v22 = vsel %vm546_vm15, %v931_v21, %v933_v20 }
 0x76d   : > { %v1748_v25 = vpack.c.bf16 %v935_v22, %v934_v17 }
 0x76f   : > { %1749 = vmatprep.subr.msk.bf16.mxu0 %vm1747_vm1, %v1748_v25 }
 0x770   : > { %1752 = vmatpush3.bf16.msk.msra.mxu0 %vm1747_vm1, %v1748_v25 }
 0x771   : > { %1654 = vmatprep.subr.bf16.mxu0 %v1653_v0 }
 0x774   : > { %1656 = vmatpush3.bf16.msra.mxu0 %v1653_v0 }
 0x775   : > { %1658 = vmatprep.subr.bf16.mxu0 %v1657_v27 }
 0x777   : > { %1548 = vmatmul.mubr.msk.f32.vlgmr.msra.gmra.mrb[4].mxu0 %vm261_vm8, %v1975_v26  ;;  %v1147_v26 = vld [vmem:[%s2123_s3 + $0x48] sm:$0xff]  ;;  %vm1235_vm8 = vcmask 130048  }
 0x778   : > { %1660 = vmatpush3.bf16.msra.mxu0 %v1657_v27  ;;  %v1673_v37 = vpack.c.bf16 %v1147_v26, %v1146_v36 }
 0x779   : > { %1662 = vmatprep.subr.bf16.mxu0 %v1661_v30 }
 0x77c   : > { %1664 = vmatpush3.bf16.msra.mxu0 %v1661_v30  ;;  %v953_v47 = vpop.permute.xlu0 %952 }
 0x77d   : > { %1666 = vmatprep.subr.bf16.mxu0 %v1665_v32 }
 0x780   : > { %1668 = vmatpush3.bf16.msra.mxu0 %v1665_v32  ;;  %v1046_v50 = vpop.permute.xlu0 %1045 }
 0x781   : > { %1670 = vmatprep.subr.bf16.mxu0 %v1669_v35  ;;  %v1124_v54 = vadd.f32 %v2038_v1, %v1046_v50 }
 0x784   : > { %1672 = vmatpush3.bf16.msra.mxu0 %v1669_v35  ;;  %v1233_v2 = vpop.permute.xlu0 %1232 }
 0x785   : > { %1674 = vmatprep.subr.bf16.mxu0 %v1673_v37 }
 0x788   : > { %1676 = vmatpush3.bf16.msra.mxu0 %v1673_v37 }
 0x789   : > { %1678 = vmatprep.subr.bf16.mxu0 %v1677_v40 }
 0x78c   : > { %1680 = vmatpush3.bf16.msra.mxu0 %v1677_v40 }
 0x78d   : > { %1682 = vmatprep.subr.bf16.mxu0 %v1681_v43 }
 0x790   : > { %1684 = vmatpush3.bf16.msra.mxu0 %v1681_v43 }
 0x791   : > { %1686 = vmatprep.subr.bf16.mxu0 %v1685_v46 }
 0x794   : > { %1688 = vmatpush3.bf16.msra.mxu0 %v1685_v46 }
 0x84a   : > { %v1549_v49 = vpop.f32.mrb[4].mxu0 }
 0x84b   : > { %v1036_v51 = vadd.f32 %v1549_v49, %v958_v48  ;;  %v1030_v52 = vpop.f32.mrb[5].mxu0 }
 0x84c   : > { %v1031_v10 = vadd.f32 %v1030_v52, %v953_v47 }
 0x84d   : > { %v1040_v13 = vmax.f32 %v1036_v51, 0.0 }
 0x84e   : > { %v1039_v55 = vmax.f32 %v1031_v10, 0.0 }
 0x84f   : > { %v1133_v56 = vadd.f32 %v1129_v12, %v1040_v13 }
 0x850   : > { %v1132_v57 = vadd.f32 %v1124_v54, %v1039_v55 }
 0x851   : > { %v1135_v58 = vmax.f32 %v1133_v56, 0.0 }
 0x852   : > { %v1134_v59 = vmax.f32 %v1132_v57, 0.0 }
 0x853   : > { %v1137_v61 = vmax.f32 %v1135_v58, 0.0 }
 0x854   : > { %v1136_v60 = vmax.f32 %v1134_v59, 0.0 }
 0x856   : > { %1587 = vmatprep.mubr.f32.mxu0 %v1136_v60 }
 0x857   : > { %1588 = vmatmul.mubr.f32.vlgmr.msra.gmra.mrb[6].mxu0 %v1137_v61 }
 0x92a   : > { %v1589_v62 = vpop.f32.mrb[6].mxu0 }
 0x92b   : > { %v1220_v63 = vpop.f32.mrb[7].mxu0 }
 0x92c   : > { %v1690_v0 = vpack.c.bf16 %v1589_v62, %v1220_v63 }
 0x92e   : > { %1691 = vmatpush3.bf16.msra.mxu1 %v1690_v0 }
 0x931   : > { %1595 = vmatmul.mubr.msk.f32.vlgmr.msra.gmra.mrb[10].mxu1 %vm1235_vm8, %v2043_v3 }
 0xa04   : > { %v1304_v1 = vpop.f32.mrb[10].mxu1 }
 0xa05   : > { %v1305_v4 = vadd.f32 %v1304_v1, %v1233_v2  ;;  %v1596_v6 = vpop.f32.mrb[11].mxu1 }
 0xa07   : > { %1309 = vst.msk [vmem:[%s192_s12] sm:$0x1f] %vm1308_vm9, %v1305_v4 }
 0xa08 PF: > { %s14_s15 = sadd.s32 1, %s1759_s15  }
 0xa09   : > { %p11_p4 = scmp.ge.s32.totalorder %s14_s15, 4  }
 0xa0b   :  { %13 = sbr.rel (!%p11_p4) target bundleno = 1 (0x1), region = 66 }

</bundles_post_ra>
